<compile_context>
chip_gen: v7x
topology: tpu7x:2x2x1
jax: 0.10.0
libtpu: 0.0.40
codegen_flags: <defaults>
</compile_context>

<pallas_src>
import functools

import jax
import jax.numpy as jnp
from jax.experimental import pallas as pl
from jax.experimental.pallas import tpu as pltpu


def _round_up(n: int, m: int) -> int:
    return ((n + m - 1) // m) * m


def _policy_net_kernel(*refs, n_hidden, hidden_dims, compute_dtype):
    """Fused MLP forward.

    refs = (x, w_1..w_n, bhid, w_head_t, head_tab, out)
      x        : (tb, state_dim)       compute_dtype
      w_i      : (d_{i-1}, d_i)        compute_dtype   (resident)
      bhid     : (n_hidden, h_max)     f32             (resident)
      w_head_t : (2A, d_last)          compute_dtype   (resident, mu rows then std rows)
      head_tab : (2A, 3)               f32             (resident: bias | scale | shift)
      out      : (2A, tb)              f32             (transposed, packed output)
    """
    x_ref = refs[0]
    w_refs = refs[1:1 + n_hidden]
    bhid_ref = refs[1 + n_hidden]
    wht_ref = refs[2 + n_hidden]
    tab_ref = refs[3 + n_hidden]
    out_ref = refs[4 + n_hidden]

    h = x_ref[...]
    for li in range(n_hidden):
        hd = hidden_dims[li]
        # MXU matmul in the streaming dtype, f32 accumulation; bias + ReLU in f32.
        h = jnp.dot(h.astype(compute_dtype), w_refs[li][...],
                    preferred_element_type=jnp.float32)
        h = jnp.maximum(h + bhid_ref[li:li + 1, :hd], 0.0)

    # Fused mu/std head computed directly in transposed (packed) form:
    #   yt[a, b] = sum_k w_head_t[a, k] * h[b, k]   ->  (2A, tb)
    # so the epilogue and the HBM store only touch the 2A useful rows.
    yt = jax.lax.dot_general(
        wht_ref[...], h.astype(compute_dtype),
        dimension_numbers=(((1,), (1,)), ((), ())),
        preferred_element_type=jnp.float32)

    bias = tab_ref[:, 0:1]    # (2A, 1)
    scale = tab_ref[:, 1:2]   # 1.0 for mean rows, 0.5 for std rows
    shift = tab_ref[:, 2:3]   # 0.0 for mean rows, 0.6 for std rows
    out_ref[...] = jnp.tanh(yt + bias) * scale + shift


def pack_params(params, hidden_layers_dim, *, dtype=jnp.float32):
    """One-time, host-side packing of the (transposed-layout) parameters.

    Hoisted out of the per-call path: call once per parameter update and reuse
    the result.  Returns an array-only pytree (jit friendly).
    """
    n_hidden = len(hidden_layers_dim)
    action_dim = params["wmu"].shape[1]
    h_max = max(hidden_layers_dim)

    ws = tuple(params[f"w{i + 1}"].astype(dtype) for i in range(n_hidden))

    bhid = jnp.zeros((n_hidden, h_max), jnp.float32)
    for i in range(n_hidden):
        bhid = bhid.at[i, :hidden_layers_dim[i]].set(params[f"b{i + 1}"].reshape(-1))

    # Transposed, fused head weights: rows [0,A) = mu, rows [A,2A) = std.
    w_head_t = jnp.concatenate([params["wmu"].T, params["wstd"].T], axis=0).astype(dtype)

    # Per-row (bias, scale, shift) epilogue table, kept in f32.
    bias = jnp.concatenate([params["bmu"].reshape(-1), params["bstd"].reshape(-1)])
    scale = jnp.concatenate([jnp.full((action_dim,), 1.0, jnp.float32),
                             jnp.full((action_dim,), 0.5, jnp.float32)])
    shift = jnp.concatenate([jnp.zeros((action_dim,), jnp.float32),
                             jnp.full((action_dim,), 0.6, jnp.float32)])
    head_tab = jnp.stack([bias, scale, shift], axis=1).astype(jnp.float32)  # (2A, 3)

    return {"ws": ws, "bhid": bhid, "w_head_t": w_head_t, "head_tab": head_tab}


def policy_net_forward(x, packed, *, tile_b=2048):
    """x: [B, state_dim].  packed: output of pack_params.  Returns (mean, std)."""
    B, state_dim = x.shape
    ws = packed["ws"]
    n_hidden = len(ws)
    hidden_dims = tuple(int(w.shape[1]) for w in ws)
    w_head_t = packed["w_head_t"]
    two_a = int(w_head_t.shape[0])
    action_dim = two_a // 2
    h_max = int(packed["bhid"].shape[1])
    compute_dtype = ws[0].dtype

    x = x.astype(compute_dtype)

    # --- batch tiling -----------------------------------------------------
    # Output is stored transposed (2A, B): its lane axis is the batch, so a
    # batch tile must be either the full padded batch or a multiple of 128.
    # Use two grid steps whenever possible so both v7x TensorCores get work;
    # big tiles amortize the per-grid-step overhead.
    tile_b = max(128, _round_up(int(tile_b), 128))
    b_pad = _round_up(B, 8)
    if b_pad <= 128:
        tb = b_pad                                  # single tile == full array
    elif b_pad <= 2 * tile_b:
        tb = _round_up((b_pad + 1) // 2, 128)       # exactly two grid steps
        b_pad = 2 * tb
    else:
        tb = tile_b
        b_pad = _round_up(B, tile_b)
    if b_pad != B:
        x = jnp.pad(x, ((0, b_pad - B), (0, 0)))
    grid = (b_pad // tb,)

    kernel = functools.partial(
        _policy_net_kernel,
        n_hidden=n_hidden, hidden_dims=hidden_dims, compute_dtype=compute_dtype)

    in_specs = [
        # x streams one batch tile per grid step (double-buffered by BlockSpec)
        pl.BlockSpec((tb, state_dim), lambda i: (i, 0)),
    ]
    for li in range(n_hidden):
        in_dim = int(ws[li].shape[0])
        out_dim = hidden_dims[li]
        # weights / biases: constant index map -> resident in VMEM across steps
        in_specs.append(pl.BlockSpec((in_dim, out_dim), lambda i: (0, 0)))
    in_specs.append(pl.BlockSpec((n_hidden, h_max), lambda i: (0, 0)))
    in_specs.append(pl.BlockSpec((two_a, hidden_dims[-1]), lambda i: (0, 0)))
    in_specs.append(pl.BlockSpec((two_a, 3), lambda i: (0, 0)))

    out_t = pl.pallas_call(
        kernel,
        out_shape=jax.ShapeDtypeStruct((two_a, b_pad), jnp.float32),
        grid_spec=pltpu.PrefetchScalarGridSpec(
            num_scalar_prefetch=0,
            grid=grid,
            in_specs=in_specs,
            out_specs=pl.BlockSpec((two_a, tb), lambda i: (0, i)),
        ),
        compiler_params=pltpu.CompilerParams(
            dimension_semantics=("parallel",)),
    )(x, *ws, packed["bhid"], w_head_t, packed["head_tab"])

    mean_ = out_t[:action_dim, :B].T
    std = out_t[action_dim:two_a, :B].T
    return mean_, std


def init_params(key, state_dim, hidden_layers_dim, action_dim):
    """Deterministic synthetic parameters (same shapes as the torch module)."""
    dims = [state_dim] + list(hidden_layers_dim)
    keys = jax.random.split(key, 2 * len(hidden_layers_dim) + 4)
    params = {}
    for i in range(len(hidden_layers_dim)):
        fan_in, fan_out = dims[i], dims[i + 1]
        params[f"w{i + 1}"] = 0.1 * jax.random.normal(keys[2 * i], (fan_in, fan_out), jnp.float32)
        params[f"b{i + 1}"] = 0.1 * jax.random.normal(keys[2 * i + 1], (1, fan_out), jnp.float32)
    h_last = dims[-1]
    params["wmu"] = 0.1 * jax.random.normal(keys[-4], (h_last, action_dim), jnp.float32)
    params["bmu"] = 0.1 * jax.random.normal(keys[-3], (1, action_dim), jnp.float32)
    params["wstd"] = 0.1 * jax.random.normal(keys[-2], (h_last, action_dim), jnp.float32)
    params["bstd"] = 0.1 * jax.random.normal(keys[-1], (1, action_dim), jnp.float32)
    return params


def reference_forward(x, params):
    """Plain-JAX reference mirroring the torch forward."""
    h = jnp.maximum(x @ params["w1"] + params["b1"], 0.0)
    h = jnp.maximum(h @ params["w2"] + params["b2"], 0.0)
    mean_ = jnp.tanh(h @ params["wmu"] + params["bmu"])
    std = 0.5 * jnp.tanh(h @ params["wstd"] + params["bstd"]) + 0.6
    return mean_, std


if __name__ == "__main__":
    state_dim = 16
    hidden_layers_dim = [32, 32]
    action_dim = 4
    batch = 8

    key = jax.random.PRNGKey(0)
    key_x, key_p = jax.random.split(key)
    x = jax.random.normal(key_x, (batch, state_dim), jnp.float32)
    params = init_params(key_p, state_dim, hidden_layers_dim, action_dim)
    ref_mean, ref_std = reference_forward(x, params)

    fwd = jax.jit(policy_net_forward, static_argnames=("tile_b",))

    # f32 path: tight check against the plain-JAX reference.
    packed_f32 = pack_params(params, hidden_layers_dim, dtype=jnp.float32)
    mean_, std = fwd(x, packed_f32)
    mean_ = jax.block_until_ready(mean_)
    std = jax.block_until_ready(std)
    assert mean_.shape == (batch, action_dim) and std.shape == (batch, action_dim)
    assert jnp.allclose(mean_, ref_mean, atol=1e-5, rtol=1e-5)
    assert jnp.allclose(std, ref_std, atol=1e-5, rtol=1e-5)

    # bf16 streaming path (halved x / weight DMA bytes; f32 accumulation + epilogue).
    packed_bf16 = pack_params(params, hidden_layers_dim, dtype=jnp.bfloat16)
    mean_b, std_b = fwd(x, packed_bf16)
    mean_b = jax.block_until_ready(mean_b)
    std_b = jax.block_until_ready(std_b)
    assert jnp.allclose(mean_b, ref_mean, atol=3e-2, rtol=3e-2)
    assert jnp.allclose(std_b, ref_std, atol=3e-2, rtol=3e-2)

    # medium-batch smoke test exercising the two-grid-step (both-TC) path.
    xb = jax.random.normal(key_x, (200, state_dim), jnp.float32)
    mb, sb = fwd(xb, packed_f32)
    rb_m, rb_s = reference_forward(xb, params)
    mb = jax.block_until_ready(mb)
    sb = jax.block_until_ready(sb)
    assert mb.shape == (200, action_dim) and sb.shape == (200, action_dim)
    assert jnp.allclose(mb, rb_m, atol=1e-5, rtol=1e-5)
    assert jnp.allclose(sb, rb_s, atol=1e-5, rtol=1e-5)

    print("KERNEL_OK")
</pallas_src>

<mosaic_0001>
module attributes {stable_mosaic.version = 11 : i64} {
  func.func @_policy_net_kernel(%arg0: i32, %arg1: memref<8x16xf32, #tpu.memory_space<vmem>>, %arg2: memref<16x32xf32, #tpu.memory_space<vmem>>, %arg3: memref<32x32xf32, #tpu.memory_space<vmem>>, %arg4: memref<2x32xf32, #tpu.memory_space<vmem>>, %arg5: memref<8x32xf32, #tpu.memory_space<vmem>>, %arg6: memref<8x3xf32, #tpu.memory_space<vmem>>, %arg7: memref<8x8xf32, #tpu.memory_space<vmem>>) attributes {dimension_semantics = [#tpu.dimension_semantics<parallel>], iteration_bounds = array<i64: 1>, scalar_prefetch = 0 : i64, scratch_operands = 0 : i64, tpu.core_type = #tpu.core_type<tc>, window_params = [{transform_indices = @transform_0, window_bounds = array<i64: 8, 16>}, {pipeline_mode = #tpu.pipeline_mode<synchronous>, transform_indices = @transform_1, window_bounds = array<i64: 16, 32>}, {pipeline_mode = #tpu.pipeline_mode<synchronous>, transform_indices = @transform_2, window_bounds = array<i64: 32, 32>}, {pipeline_mode = #tpu.pipeline_mode<synchronous>, transform_indices = @transform_3, window_bounds = array<i64: 2, 32>}, {pipeline_mode = #tpu.pipeline_mode<synchronous>, transform_indices = @transform_4, window_bounds = array<i64: 8, 32>}, {pipeline_mode = #tpu.pipeline_mode<synchronous>, transform_indices = @transform_5, window_bounds = array<i64: 8, 3>}, {transform_indices = @transform_6, window_bounds = array<i64: 8, 8>}]} {
    %c0 = arith.constant 0 : index
    %c0_0 = arith.constant 0 : index
    %0 = vector.load %arg1[%c0, %c0_0] : memref<8x16xf32, #tpu.memory_space<vmem>>, vector<8x16xf32>
    %c0_1 = arith.constant 0 : index
    %c0_2 = arith.constant 0 : index
    %1 = vector.load %arg2[%c0_1, %c0_2] : memref<16x32xf32, #tpu.memory_space<vmem>>, vector<16x32xf32>
    %cst = arith.constant dense<0.000000e+00> : vector<8x32xf32>
    %2 = tpu.matmul %0, %1, %cst {dimension_numbers = #tpu.dot_dimension_numbers<[1], [0], [0], [1], [0, 0, 1, 1], [], []>} : vector<8x16xf32>, vector<16x32xf32>, vector<8x32xf32> -> vector<8x32xf32>
    %c0_3 = arith.constant 0 : index
    %c0_4 = arith.constant 0 : index
    %3 = vector.load %arg4[%c0_3, %c0_4] : memref<2x32xf32, #tpu.memory_space<vmem>>, vector<1x32xf32>
    %4 = vector.broadcast %3 : vector<1x32xf32> to vector<8x32xf32>
    %5 = arith.addf %2, %4 : vector<8x32xf32>
    %cst_5 = arith.constant 0.000000e+00 : f32
    %6 = vector.broadcast %cst_5 : f32 to vector<8x32xf32>
    %7 = arith.maximumf %5, %6 : vector<8x32xf32>
    %c0_6 = arith.constant 0 : index
    %c0_7 = arith.constant 0 : index
    %8 = vector.load %arg3[%c0_6, %c0_7] : memref<32x32xf32, #tpu.memory_space<vmem>>, vector<32x32xf32>
    %cst_8 = arith.constant dense<0.000000e+00> : vector<8x32xf32>
    %9 = tpu.matmul %7, %8, %cst_8 {dimension_numbers = #tpu.dot_dimension_numbers<[1], [0], [0], [1], [0, 0, 1, 1], [], []>} : vector<8x32xf32>, vector<32x32xf32>, vector<8x32xf32> -> vector<8x32xf32>
    %c1 = arith.constant 1 : index
    %c0_9 = arith.constant 0 : index
    %10 = vector.load %arg4[%c1, %c0_9] : memref<2x32xf32, #tpu.memory_space<vmem>>, vector<1x32xf32>
    %11 = vector.broadcast %10 : vector<1x32xf32> to vector<8x32xf32>
    %12 = arith.addf %9, %11 : vector<8x32xf32>
    %cst_10 = arith.constant 0.000000e+00 : f32
    %13 = vector.broadcast %cst_10 : f32 to vector<8x32xf32>
    %14 = arith.maximumf %12, %13 : vector<8x32xf32>
    %c0_11 = arith.constant 0 : index
    %c0_12 = arith.constant 0 : index
    %15 = vector.load %arg5[%c0_11, %c0_12] : memref<8x32xf32, #tpu.memory_space<vmem>>, vector<8x32xf32>
    %cst_13 = arith.constant dense<0.000000e+00> : vector<8x8xf32>
    %16 = tpu.matmul %15, %14, %cst_13 {dimension_numbers = #tpu.dot_dimension_numbers<[1], [1], [0], [0], [0, 0, 1, 0], [], []>} : vector<8x32xf32>, vector<8x32xf32>, vector<8x8xf32> -> vector<8x8xf32>
    %c0_14 = arith.constant 0 : index
    %c0_15 = arith.constant 0 : index
    %17 = vector.load %arg6[%c0_14, %c0_15] : memref<8x3xf32, #tpu.memory_space<vmem>>, vector<8x1xf32>
    %c0_16 = arith.constant 0 : index
    %c1_17 = arith.constant 1 : index
    %18 = vector.load %arg6[%c0_16, %c1_17] : memref<8x3xf32, #tpu.memory_space<vmem>>, vector<8x1xf32>
    %c0_18 = arith.constant 0 : index
    %c2 = arith.constant 2 : index
    %19 = vector.load %arg6[%c0_18, %c2] : memref<8x3xf32, #tpu.memory_space<vmem>>, vector<8x1xf32>
    %20 = vector.broadcast %17 : vector<8x1xf32> to vector<8x8xf32>
    %21 = arith.addf %16, %20 : vector<8x8xf32>
    %22 = math.tanh %21 : vector<8x8xf32>
    %23 = vector.broadcast %18 : vector<8x1xf32> to vector<8x8xf32>
    %24 = arith.mulf %22, %23 : vector<8x8xf32>
    %25 = vector.broadcast %19 : vector<8x1xf32> to vector<8x8xf32>
    %26 = arith.addf %24, %25 : vector<8x8xf32>
    %c0_19 = arith.constant 0 : index
    %c0_20 = arith.constant 0 : index
    %27 = vector.load %arg7[%c0_19, %c0_20] : memref<8x8xf32, #tpu.memory_space<vmem>>, vector<8x8xf32>
    tpu.vector_store %arg7[%c0_19, %c0_20], %26 {strides = array<i32>} : memref<8x8xf32, #tpu.memory_space<vmem>>, vector<8x8xf32>,
    return
  }
  func.func @transform_0(%arg0: i32) -> (i32, i32) {
    %c0_i32 = arith.constant 0 : i32
    %c0_i32_0 = arith.constant 0 : i32
    return %arg0, %c0_i32 : i32, i32
  }
  func.func @transform_1(%arg0: i32) -> (i32, i32) {
    %c0_i32 = arith.constant 0 : i32
    %c0_i32_0 = arith.constant 0 : i32
    %c0_i32_1 = arith.constant 0 : i32
    return %c0_i32, %c0_i32_0 : i32, i32
  }
  func.func @transform_2(%arg0: i32) -> (i32, i32) {
    %c0_i32 = arith.constant 0 : i32
    %c0_i32_0 = arith.constant 0 : i32
    %c0_i32_1 = arith.constant 0 : i32
    return %c0_i32, %c0_i32_0 : i32, i32
  }
  func.func @transform_3(%arg0: i32) -> (i32, i32) {
    %c0_i32 = arith.constant 0 : i32
    %c0_i32_0 = arith.constant 0 : i32
    %c0_i32_1 = arith.constant 0 : i32
    return %c0_i32, %c0_i32_0 : i32, i32
  }
  func.func @transform_4(%arg0: i32) -> (i32, i32) {
    %c0_i32 = arith.constant 0 : i32
    %c0_i32_0 = arith.constant 0 : i32
    %c0_i32_1 = arith.constant 0 : i32
    return %c0_i32, %c0_i32_0 : i32, i32
  }
  func.func @transform_5(%arg0: i32) -> (i32, i32) {
    %c0_i32 = arith.constant 0 : i32
    %c0_i32_0 = arith.constant 0 : i32
    %c0_i32_1 = arith.constant 0 : i32
    return %c0_i32, %c0_i32_0 : i32, i32
  }
  func.func @transform_6(%arg0: i32) -> (i32, i32) {
    %c0_i32 = arith.constant 0 : i32
    %c0_i32_0 = arith.constant 0 : i32
    return %c0_i32, %arg0 : i32, i32
  }
}

</mosaic_0001>

<bundles_post_ra>
// kernel: policy_net_forward.1
= control target key start
LH: loop header
LB: loop body
LE: loop exit
PB: predicated region body
PF: predicated region fallthrough
CT: control target
= control target key end

     0   :  { %11 = vsyncpa [#allocation3], 0  ;;  %s526_s0 = inlined_call_operand.vmem [shape: f32[8,16], index: 0, kind: input, shape index: {}]   ;;  %s527_s1 = inlined_call_operand.vmem [shape: f32[16,32], index: 1, kind: input, shape index: {}]   ;;  %s528_s2 = inlined_call_operand.hbm [shape: f32[32,32], index: 2, kind: input, shape index: {}]   ;;  %s529_s3 = inlined_call_operand.vmem [shape: f32[2,32], index: 3, kind: input, shape index: {}]   ;;  %s530_s4 = inlined_call_operand.hbm [shape: f32[8,32], index: 4, kind: input, shape index: {}]   ;;  %s531_s5 = inlined_call_operand.vmem [shape: f32[8,3], index: 5, kind: input, shape index: {}]   ;;  %s532_s6 = inlined_call_operand.vmem [shape: f32[8,8], index: 6, kind: output, shape index: {}]  }
   0x1   :  { %12 = vsyncpa [#allocation5], 0  ;;  %s430_s21 = smov [#allocation2]   ;;  %s382_s25 = scalar_lea.hbm %s528_s2, 512 }
   0x2   :  { %s22_s22 = sshll.u32 %s430_s21, 4  ;;  %p383_p0 = scmp.ne.s32.totalorder %s528_s2, %s382_s25  ;;  %s23_s22 = int_to_ptr.vmem [resolvable:$true] %s22_s22 }
   0x3   :  { %p386_p1 = scmp.lt.u32.totalorder %s382_s25, %s528_s2 }
   0x5   :  { %p388_p2 = pnand %p386_p1, %p383_p0 }
   0x7   :  { %391 = shalt.err (!%p388_p2)
}
   0x8   :  { %s392_s30 = scalar_lea.vmem %s23_s22, 512  ;;  %p397_p4 = scmp.lt.s32.totalorder %s23_s22, %s23_s22 }
   0x9   :  { %p393_p3 = scmp.ne.s32.totalorder %s23_s22, %s392_s30  ;;  %p398_p5 = scmp.lt.s32.totalorder %s392_s30, %s392_s30 }
   0xb   :  { %p399_p6 = por %p398_p5, %p397_p4 }
   0xd   :  { %p400_p7 = pnand %p399_p6, %p393_p3 }
   0xf   :  { %403 = shalt.err (!%p400_p7)
}
  0x10   :  { %s431_s7 = smov 128   ;;  %s432_s8 = smov 8  }
  0x11   :  { %28 = dma.hbm_to_vmem [thread:$0]  %s528_s2, 512, %s23_s22, [#allocation3], %s431_s7, %s431_s7, %s432_s8  }
  0x12   :  { %s433_s11 = smov [#allocation4]   ;;  %s404_s15 = scalar_lea.hbm %s530_s4, 128 }
  0x13   :  { %s37_s12 = sshll.u32 %s433_s11, 4  ;;  %p405_p8 = scmp.ne.s32.totalorder %s530_s4, %s404_s15  ;;  %s38_s12 = int_to_ptr.vmem [resolvable:$true] %s37_s12 }
  0x14   :  { %p408_p9 = scmp.lt.u32.totalorder %s404_s15, %s530_s4 }
  0x16   :  { %p410_p10 = pnand %p408_p9, %p405_p8 }
  0x18   :  { %413 = shalt.err (!%p410_p10)
}
  0x19   :  { %s414_s20 = scalar_lea.vmem %s38_s12, 128  ;;  %p419_p12 = scmp.lt.s32.totalorder %s38_s12, %s38_s12 }
  0x1a   :  { %p415_p11 = scmp.ne.s32.totalorder %s38_s12, %s414_s20  ;;  %p420_p13 = scmp.lt.s32.totalorder %s414_s20, %s414_s20 }
  0x1c   :  { %p421_p0 = por %p420_p13, %p419_p12 }
  0x1e   :  { %p422_p1 = pnand %p421_p0, %p415_p11 }
  0x20   :  { %425 = shalt.err (!%p422_p1)
}
  0x21   :  { %40 = dma.hbm_to_vmem [thread:$0]  %s530_s4, 128, %s38_s12, [#allocation5]  }
  0x22   :  { %426 = dma.done.wait [#allocation3], 512  }
  0x23   :  { %427 = vsyncadd [#allocation3], 4294966784 }
  0x24   :  { %428 = dma.done.wait [#allocation5], 128  }
  0x25   :  { %429 = vsyncadd [#allocation5], 4294967168  ;;  %v434_v0 = vmov 0.0|0.0   ;;  %vm435_vm0 = vmmov 0   ;;  %v436_v1 = vmov 0.0   ;;  %v50_v2 = vld [vmem:[%s527_s1] sm:$0xff] }
  0x26   :  { %357 = vmatprep.subr.bf16.mxu0 %v434_v0  ;;  %338 = vmatprep.mubr.msk.f32.mxu0 %vm435_vm0, %v436_v1  ;;  %v51_v3 = vld [vmem:[%s527_s1 + $0x8] sm:$0xff]  ;;  %v132_v5 = vld [vmem:[#allocation2] sm:$0xff]  ;;  %vm57_vm1 = vcmask 130048   ;;  %v134_v9 = vld [vmem:[#allocation2 + $0x10] sm:$0xff]  ;;  %vm141_vm2 = vcmask 261120   ;;  %v437_v18 = vmov 0  }
  0x27   :  { %360 = vmatprep.subr.bf16.mxu1 %v434_v0  ;;  %349 = vmatprep.mubr.msk.f32.mxu1 %vm435_vm0, %v436_v1  ;;  %v358_v4 = vpack.c.bf16 %v51_v3, %v50_v2  ;;  %v133_v6 = vld [vmem:[#allocation2 + $0x8] sm:$0xff]  ;;  %v49_v8 = vld [vmem:[%s526_s0] sm:$0xff]  ;;  %v135_v10 = vld [vmem:[#allocation2 + $0x18] sm:$0xff]  ;;  %v438_v19 = vmov 2   ;;  %v439_v20 = vmov 1   ;;  %vm310_vm3 = vcmask 64512  }
  0x28   :  { %v361_v7 = vpack.c.bf16 %v133_v6, %v132_v5  ;;  %v364_v11 = vpack.c.bf16 %v135_v10, %v134_v9  ;;  %v318_v12 = vld [vmem:[%s529_s3] ss:$0 sm:$0xff]  ;;  %376 = vset.pattern.permute.xlu0 %v437_v18  ;;  %378 = vset.pattern.permute.xlu1 %v438_v19  ;;  %v320_v21 = vld [vmem:[%s529_s3 + $0x1] ss:$0 sm:$0xff] }
  0x29   :  { %359 = vmatpush3.bf16.msra.mxu0 %v358_v4  ;;  %v217_v17 = vld [vmem:[%s531_s5] sm:$0xff] }
  0x2a   :  { %362 = vmatpush3.bf16.msra.mxu1 %v361_v7  ;;  %352 = vmatprep.subr.mxu0 %v436_v1  ;;  %v216_v26 = vld [vmem:[#allocation4] sm:$0xff] }
  0x2b   :  { %363 = vmatprep.subr.bf16.mxu1 %v434_v0  ;;  %220 = vperm.xlu0 %376, %v217_v17  }
  0x2c   :  { %339 = vmatmul.mubr.msk.f32.vlgmr.msra.gmra.mrb[0].mxu0 %vm57_vm1, %v49_v8  ;;  %306 = vperm.xlu1 %378, %v217_v17  }
  0x2d   :  { %354 = vmatprep.mubr.msk.f32.mxu0 %vm435_vm0, %v436_v1 }
  0x2e   :  { %365 = vmatpush3.bf16.msra.mxu1 %v364_v11 }
  0x2f   :  { %377 = vset.pattern.permute.xlu0 %v439_v20 }
  0x30   :  { %301 = vperm.xlu0 %377, %v217_v17  }
  0x34   :  { %379 = vset.pattern.permute.xlu0 %v438_v19 }
  0xaa   :  { %v221_v27 = vpop.permute.xlu0 %220 }
  0xab   :  { %v307_v33 = vpop.permute.xlu1 %306 }
  0xaf   :  { %v302_v31 = vpop.permute.xlu0 %301 }
  0xff   :  { %v127_v13 = vpop.f32.mrb[0].mxu0 }
 0x100   :  { %v128_v14 = vadd.f32 %v318_v12, %v127_v13  ;;  %v340_v15 = vpop.f32.mrb[1].mxu0 }
 0x102   :  { %v131_v16 = vmax.f32 %v128_v14, 0.0 }
 0x104   :  { %350 = vmatmul.mubr.msk.f32.vlgmr.msra.gmra.mrb[0].mxu1 %vm141_vm2, %v131_v16 }
 0x1d7   :  { %v211_v22 = vpop.f32.mrb[0].mxu1 }
 0x1d8   :  { %v212_v23 = vadd.f32 %v320_v21, %v211_v22  ;;  %v351_v24 = vpop.f32.mrb[1].mxu1 }
 0x1da   :  { %v215_v25 = vmax.f32 %v212_v23, 0.0 }
 0x1dc   :  { %353 = vmatpush3.xpose.msk.msra.mxu0 %vm141_vm2, %v215_v25 }
 0x1df   :  { %355 = vmatmul.mubr.msk.f32.vlgmr.msra.gmra.mrb[2].mxu0 %vm141_vm2, %v216_v26 }
 0x2b2   :  { %v295_v28 = vpop.f32.mrb[2].mxu0 }
 0x2b3   :  { %v296_v29 = vadd.f32 %v295_v28, %v221_v27  ;;  %v356_v30 = vpop.f32.mrb[3].mxu0 }
 0x2b5   :  { %380 = vtanh.f32 %v296_v29 }
 0x2bf   :  { %v381_v32 = vpop.eup %380 }
 0x2c0   :  { %v304_v34 = vmul.f32 %v381_v32, %v302_v31 }
 0x2c2   :  { %v309_v35 = vadd.f32 %v307_v33, %v304_v34 }
 0x2c4   :  { %311 = vst.msk [vmem:[%s532_s6] sm:$0xff] %vm310_vm3, %v309_v35 }
 0x2c5   :  { %316 = vsyncpa [#allocation3], 1 }
 0x2c6   :  { %317 = vsyncpa [#allocation5], 1 }

</bundles_post_ra>
